<compile_context>
chip_gen: v5e
topology: v5e:2x2
jax: 0.10.0
libtpu: 0.0.40
codegen_flags: <defaults>
</compile_context>

<pallas_src>
import functools

import jax
import jax.numpy as jnp
from jax.experimental import pallas as pl
from jax.experimental.pallas import tpu as pltpu

_BN_EPS = 1e-5
_LANE = 128
_SUBLANE = 8


def _round_up(x, m):
    return ((x + m - 1) // m) * m


def _sublane_multiple(dtype):
    # packed-sublane tile multiple: 8 for 4-byte, 16 for 2-byte, 32 for 1-byte dtypes
    return max(_SUBLANE, (4 // max(jnp.dtype(dtype).itemsize, 1)) * _SUBLANE)


def _vmem_capacity_bytes():
    try:
        return int(pltpu.get_tpu_info().vmem_capacity_bytes)
    except Exception:
        return 64 * 1024 * 1024  # conservative fallback: v7x per-TensorCore VMEM


def _pick_ts(hw, n_batch, cin_p, cout_p, in_bytes, out_bytes, cap):
    """Spatial (lane) tile size: largest multiple of 128 whose working set fits the budget."""
    budget = int(cap * 0.40)                       # same capacity the vmem limit derives from
    fixed = 2 * cout_p * cin_p * in_bytes          # double-buffered resident weight block
    avail = max(budget - fixed, 2 * 1024 * 1024)
    # Per spatial column resident in VMEM (worse of the two passes):
    #   pass 1: 2x x-col (dbl buf) + f32 y col + f32 y*y col
    #   pass 2: 2x x-col (dbl buf) + f32 y col + 2x out col (dbl buf)
    per_col = 2 * cin_p * in_bytes + cout_p * 4 + max(cout_p * 4, 2 * cout_p * out_bytes)
    ts = int(avail // per_col)
    hw_cap = _round_up(hw, _LANE)
    ts = max(_LANE, min(ts, 1024, hw_cap))         # 512-1024 lanes ~ saturates HBM roofline
    ts = (ts // _LANE) * _LANE
    # keep >= ~8 total grid steps (pipelining + megacore granularity) when the data allows
    while ts > _LANE and n_batch * ((hw_cap + ts - 1) // ts) < 8:
        ts -= _LANE
    return ts


def _conv_stats_kernel(x_ref, w_ref, sum_ref, sumsq_ref):
    """Pass 1: y = W @ x_tile; accumulate per-channel (sublane) sum and sum-of-squares."""
    @pl.when(pl.program_id(1) == 0)
    def _init():
        sum_ref[...] = jnp.zeros_like(sum_ref)
        sumsq_ref[...] = jnp.zeros_like(sumsq_ref)

    y = jnp.dot(w_ref[...], x_ref[0], preferred_element_type=jnp.float32)  # (Cout_p, TS) f32
    # lane (XLU) reductions -> (Cout_p, 1); rides a free slot next to the MXU work
    sum_ref[...] += jnp.sum(y, axis=1, keepdims=True)[None]
    sumsq_ref[...] += jnp.sum(y * y, axis=1, keepdims=True)[None]


def _conv_bn_apply_kernel(x_ref, w_ref, scale_ref, shift_ref, o_ref):
    """Pass 2: recompute y for this tile and apply the folded BN affine (scale/shift)."""
    y = jnp.dot(w_ref[...], x_ref[0], preferred_element_type=jnp.float32)  # (Cout_p, TS) f32
    o_ref[...] = (y * scale_ref[...] + shift_ref[...]).astype(o_ref.dtype)[None]


def downsample_conv(x_nchw, conv_w, bn_gamma, bn_beta, *, eps=_BN_EPS,
                    compute_dtype=None, out_dtype=None):
    """1x1 stride-2 Conv2d (no bias) + train-mode BatchNorm2d (biased batch stats).

    x_nchw: (N, Cin, H, W); conv_w: (Cout, Cin, 1, 1); bn_gamma/bn_beta: (Cout,).
    compute_dtype: matmul operand dtype; defaults to bf16 when x is f32 (halves the two HBM
    reads of x).  Accumulation, statistics and the BN affine are always float32.
    out_dtype: output dtype; defaults to x's dtype (set bf16 on v5e to cut the write stream).
    """
    N, Cin, H, W = x_nchw.shape
    Cout = conv_w.shape[0]
    x_dtype = x_nchw.dtype
    if compute_dtype is None:
        compute_dtype = jnp.bfloat16 if x_dtype == jnp.float32 else x_dtype
    compute_dtype = jnp.dtype(compute_dtype)
    out_dtype = jnp.dtype(out_dtype) if out_dtype is not None else jnp.dtype(x_dtype)

    # stride-2 / kernel-1 / pad-0 conv == keep every other pixel, then a channel matmul
    Ho, Wo = (H + 1) // 2, (W + 1) // 2
    hw = Ho * Wo
    m_total = N * hw

    in_bytes = compute_dtype.itemsize
    out_bytes = out_dtype.itemsize
    Cin_p = _round_up(Cin, _sublane_multiple(compute_dtype))
    Cout_p = _round_up(Cout, max(_sublane_multiple(compute_dtype), _sublane_multiple(out_dtype)))

    cap = _vmem_capacity_bytes()
    TS = _pick_ts(hw, N, Cin_p, Cout_p, in_bytes, out_bytes, cap)
    HW_p = _round_up(hw, TS)
    n_t = HW_p // TS
    vmem_limit = int(cap * 0.5)

    # Fused stride-2 slice + reshape + cast + zero-pad of the kept quarter of x (one HBM pass).
    # Zero-padded Cin rows / spatial columns are inert for both the conv and the statistics.
    x_s = x_nchw[:, :, ::2, ::2].reshape(N, Cin, hw)
    if (Cin_p, HW_p) == (Cin, hw) and x_s.dtype == compute_dtype:
        x_p = x_s
    else:
        x_p = jnp.zeros((N, Cin_p, HW_p), compute_dtype).at[:, :Cin, :hw].set(
            x_s.astype(compute_dtype))

    w2 = conv_w.reshape(Cout, Cin)                 # (Cout, Cin): already the layout we matmul
    if (Cout_p, Cin_p) == (Cout, Cin) and w2.dtype == compute_dtype:
        w_p = w2
    else:
        w_p = jnp.zeros((Cout_p, Cin_p), compute_dtype).at[:Cout, :Cin].set(
            w2.astype(compute_dtype))

    gamma_p = jnp.zeros((Cout_p,), jnp.float32).at[:Cout].set(bn_gamma.astype(jnp.float32))
    beta_p = jnp.zeros((Cout_p,), jnp.float32).at[:Cout].set(bn_beta.astype(jnp.float32))

    matmul_flops = 2 * N * HW_p * Cin_p * Cout_p
    x_bytes = N * Cin_p * HW_p * in_bytes
    w_bytes = Cout_p * Cin_p * in_bytes

    # --- pass 1: per-channel sum / sum-of-squares of y = W @ x ------------------------------
    # batch axis "parallel" (v7x megacore splits it), spatial-tile axis "arbitrary" with a
    # per-batch resident f32 accumulator; partial sums are reduced across N in JAX below.
    psum, psumsq = pl.pallas_call(
        _conv_stats_kernel,
        out_shape=(jax.ShapeDtypeStruct((N, Cout_p, 1), jnp.float32),
                   jax.ShapeDtypeStruct((N, Cout_p, 1), jnp.float32)),
        grid=(N, n_t),
        in_specs=[
            pl.BlockSpec((1, Cin_p, TS), lambda n, t: (n, 0, t)),
            pl.BlockSpec((Cout_p, Cin_p), lambda n, t: (0, 0)),
        ],
        out_specs=(
            pl.BlockSpec((1, Cout_p, 1), lambda n, t: (n, 0, 0)),
            pl.BlockSpec((1, Cout_p, 1), lambda n, t: (n, 0, 0)),
        ),
        compiler_params=pltpu.CompilerParams(
            dimension_semantics=("parallel", "arbitrary"),
            vmem_limit_bytes=vmem_limit),
        cost_estimate=pl.CostEstimate(
            flops=matmul_flops,
            bytes_accessed=x_bytes + w_bytes + 2 * N * Cout_p * 4,
            transcendentals=0),
    )(x_p, w_p)

    # Fold batch stats + BN affine into one per-channel scale/shift (tiny, plain JAX, f32).
    col_sum = jnp.sum(psum[:, :, 0], axis=0)
    col_sumsq = jnp.sum(psumsq[:, :, 0], axis=0)
    mean = col_sum / m_total                                    # biased (train-mode) stats
    var = jnp.maximum(col_sumsq / m_total - mean * mean, 0.0)   # guard cancellation
    inv = jax.lax.rsqrt(var + eps)
    scale = (gamma_p * inv).reshape(Cout_p, 1)
    shift = (beta_p - mean * gamma_p * inv).reshape(Cout_p, 1)

    # --- pass 2: y = W @ x with folded BN affine; lane-dense, NCHW-native stores ------------
    out_p = pl.pallas_call(
        _conv_bn_apply_kernel,
        out_shape=jax.ShapeDtypeStruct((N, Cout_p, HW_p), out_dtype),
        grid=(N, n_t),
        in_specs=[
            pl.BlockSpec((1, Cin_p, TS), lambda n, t: (n, 0, t)),
            pl.BlockSpec((Cout_p, Cin_p), lambda n, t: (0, 0)),
            pl.BlockSpec((Cout_p, 1), lambda n, t: (0, 0)),
            pl.BlockSpec((Cout_p, 1), lambda n, t: (0, 0)),
        ],
        out_specs=pl.BlockSpec((1, Cout_p, TS), lambda n, t: (n, 0, t)),
        compiler_params=pltpu.CompilerParams(
            dimension_semantics=("parallel", "parallel"),   # independent tiles -> megacore
            vmem_limit_bytes=vmem_limit),
        cost_estimate=pl.CostEstimate(
            flops=matmul_flops,
            bytes_accessed=x_bytes + w_bytes + N * Cout_p * HW_p * out_bytes,
            transcendentals=0),
    )(x_p, w_p, scale, shift)

    out = out_p[:, :Cout, :hw].reshape(N, Cout, Ho, Wo)   # already NCHW: no final transpose
    # TODO(synk): nn.BatchNorm2d also updates running_mean/running_var in train mode; this
    # forward returns only the normalized activations (mean/var are available from pass 1).
    return out


if __name__ == "__main__":
    import numpy as np

    key = jax.random.PRNGKey(0)
    k_x, k_w = jax.random.split(key)

    N, Cin, H, W = 2, 4, 16, 16
    Cout = 8

    x = jax.random.normal(k_x, (N, Cin, H, W), dtype=jnp.float32)
    conv_w = jax.random.normal(k_w, (Cout, Cin, 1, 1), dtype=jnp.float32) * (2.0 / Cin) ** 0.5
    bn_gamma = jnp.ones((Cout,), dtype=jnp.float32)
    bn_beta = jnp.zeros((Cout,), dtype=jnp.float32)

    def reference(xv, wv, g, b, cd):
        # 1x1 stride-2 conv (operands in `cd`, f32 accumulation) + train-mode BatchNorm2d.
        xs = xv[:, :, ::2, ::2].astype(cd)
        w2 = wv.reshape(wv.shape[0], -1).astype(cd)
        y = jnp.einsum("nchw,oc->nohw", xs, w2, preferred_element_type=jnp.float32)
        mu = jnp.mean(y, axis=(0, 2, 3), keepdims=True)
        vr = jnp.mean((y - mu) ** 2, axis=(0, 2, 3), keepdims=True)
        return (y - mu) * jax.lax.rsqrt(vr + _BN_EPS) * g.reshape(1, -1, 1, 1) \
            + b.reshape(1, -1, 1, 1)

    # Default path: bf16 compute operands, f32 accumulation/stats, f32 output.
    out = jax.jit(downsample_conv)(x, conv_w, bn_gamma, bn_beta)
    jax.block_until_ready(out)
    assert out.shape == (N, Cout, H // 2, W // 2), out.shape
    ref = reference(x, conv_w, bn_gamma, bn_beta, jnp.bfloat16)
    err = float(np.max(np.abs(np.asarray(out) - np.asarray(ref))))
    assert np.allclose(np.asarray(out), np.asarray(ref), atol=2e-3, rtol=2e-3), err

    # Explicit f32-compute path (looser tolerance covers TPU default matmul precision).
    out32 = jax.jit(functools.partial(downsample_conv, compute_dtype=jnp.float32))(
        x, conv_w, bn_gamma, bn_beta)
    jax.block_until_ready(out32)
    ref32 = reference(x, conv_w, bn_gamma, bn_beta, jnp.float32)
    err32 = float(np.max(np.abs(np.asarray(out32) - np.asarray(ref32))))
    assert np.allclose(np.asarray(out32), np.asarray(ref32), atol=5e-2, rtol=5e-2), err32

    print("KERNEL_OK")
</pallas_src>

<mosaic_0001>
module attributes {stable_mosaic.version = 11 : i64} {
  func.func @_conv_bn_apply_kernel(%arg0: i32, %arg1: i32, %arg2: memref<1x16x128xbf16, #tpu.memory_space<vmem>>, %arg3: memref<16x16xbf16, #tpu.memory_space<vmem>>, %arg4: memref<16x1xf32, #tpu.memory_space<vmem>>, %arg5: memref<16x1xf32, #tpu.memory_space<vmem>>, %arg6: memref<1x16x128xf32, #tpu.memory_space<vmem>>) attributes {dimension_semantics = [#tpu.dimension_semantics<parallel>, #tpu.dimension_semantics<parallel>], iteration_bounds = array<i64: 2, 1>, scalar_prefetch = 0 : i64, scratch_operands = 0 : i64, tpu.core_type = #tpu.core_type<tc>, window_params = [{transform_indices = @transform_0, window_bounds = array<i64: 1, 16, 128>}, {pipeline_mode = #tpu.pipeline_mode<synchronous>, transform_indices = @transform_1, window_bounds = array<i64: 16, 16>}, {pipeline_mode = #tpu.pipeline_mode<synchronous>, transform_indices = @transform_2, window_bounds = array<i64: 16, 1>}, {pipeline_mode = #tpu.pipeline_mode<synchronous>, transform_indices = @transform_3, window_bounds = array<i64: 16, 1>}, {transform_indices = @transform_4, window_bounds = array<i64: 1, 16, 128>}]} {
    %c0 = arith.constant 0 : index
    %c0_0 = arith.constant 0 : index
    %0 = vector.load %arg3[%c0, %c0_0] : memref<16x16xbf16, #tpu.memory_space<vmem>>, vector<16x16xbf16>
    %c0_1 = arith.constant 0 : index
    %c0_2 = arith.constant 0 : index
    %c0_3 = arith.constant 0 : index
    %1 = vector.load %arg2[%c0_1, %c0_2, %c0_3] : memref<1x16x128xbf16, #tpu.memory_space<vmem>>, vector<1x16x128xbf16>
    %2 = vector.shape_cast %1 : vector<1x16x128xbf16> to vector<16x128xbf16>
    %cst = arith.constant dense<0.000000e+00> : vector<16x128xf32>
    %3 = tpu.matmul %0, %2, %cst {dimension_numbers = #tpu.dot_dimension_numbers<[1], [0], [0], [1], [0, 0, 1, 1], [], []>} : vector<16x16xbf16>, vector<16x128xbf16>, vector<16x128xf32> -> vector<16x128xf32>
    %c0_4 = arith.constant 0 : index
    %c0_5 = arith.constant 0 : index
    %4 = vector.load %arg4[%c0_4, %c0_5] : memref<16x1xf32, #tpu.memory_space<vmem>>, vector<16x1xf32>
    %5 = vector.broadcast %4 : vector<16x1xf32> to vector<16x128xf32>
    %6 = arith.mulf %3, %5 : vector<16x128xf32>
    %c0_6 = arith.constant 0 : index
    %c0_7 = arith.constant 0 : index
    %7 = vector.load %arg5[%c0_6, %c0_7] : memref<16x1xf32, #tpu.memory_space<vmem>>, vector<16x1xf32>
    %8 = vector.broadcast %7 : vector<16x1xf32> to vector<16x128xf32>
    %9 = arith.addf %6, %8 : vector<16x128xf32>
    %10 = vector.shape_cast %9 : vector<16x128xf32> to vector<1x16x128xf32>
    %c0_8 = arith.constant 0 : index
    %c0_9 = arith.constant 0 : index
    %c0_10 = arith.constant 0 : index
    %11 = vector.load %arg6[%c0_8, %c0_9, %c0_10] : memref<1x16x128xf32, #tpu.memory_space<vmem>>, vector<1x16x128xf32>
    tpu.vector_store %arg6[%c0_8, %c0_9, %c0_10], %10 {strides = array<i32>} : memref<1x16x128xf32, #tpu.memory_space<vmem>>, vector<1x16x128xf32>,
    return
  }
  func.func @transform_0(%arg0: i32, %arg1: i32) -> (i32, i32, i32) {
    %c0_i32 = arith.constant 0 : i32
    %c0_i32_0 = arith.constant 0 : i32
    return %arg0, %c0_i32, %arg1 : i32, i32, i32
  }
  func.func @transform_1(%arg0: i32, %arg1: i32) -> (i32, i32) {
    %c0_i32 = arith.constant 0 : i32
    %c0_i32_0 = arith.constant 0 : i32
    %c0_i32_1 = arith.constant 0 : i32
    return %c0_i32, %c0_i32_0 : i32, i32
  }
  func.func @transform_2(%arg0: i32, %arg1: i32) -> (i32, i32) {
    %c0_i32 = arith.constant 0 : i32
    %c0_i32_0 = arith.constant 0 : i32
    %c0_i32_1 = arith.constant 0 : i32
    return %c0_i32, %c0_i32_0 : i32, i32
  }
  func.func @transform_3(%arg0: i32, %arg1: i32) -> (i32, i32) {
    %c0_i32 = arith.constant 0 : i32
    %c0_i32_0 = arith.constant 0 : i32
    %c0_i32_1 = arith.constant 0 : i32
    return %c0_i32, %c0_i32_0 : i32, i32
  }
  func.func @transform_4(%arg0: i32, %arg1: i32) -> (i32, i32, i32) {
    %c0_i32 = arith.constant 0 : i32
    %c0_i32_0 = arith.constant 0 : i32
    return %arg0, %c0_i32, %arg1 : i32, i32, i32
  }
}

module attributes {stable_mosaic.version = 11 : i64} {
  func.func @_conv_stats_kernel(%arg0: i32, %arg1: i32, %arg2: memref<1x16x128xbf16, #tpu.memory_space<vmem>>, %arg3: memref<16x16xbf16, #tpu.memory_space<vmem>>, %arg4: memref<1x16x1xf32, #tpu.memory_space<vmem>>, %arg5: memref<1x16x1xf32, #tpu.memory_space<vmem>>) attributes {dimension_semantics = [#tpu.dimension_semantics<parallel>, #tpu.dimension_semantics<arbitrary>], iteration_bounds = array<i64: 2, 1>, scalar_prefetch = 0 : i64, scratch_operands = 0 : i64, tpu.core_type = #tpu.core_type<tc>, window_params = [{transform_indices = @transform_0, window_bounds = array<i64: 1, 16, 128>}, {pipeline_mode = #tpu.pipeline_mode<synchronous>, transform_indices = @transform_1, window_bounds = array<i64: 16, 16>}, {transform_indices = @transform_2, window_bounds = array<i64: 1, 16, 1>}, {transform_indices = @transform_3, window_bounds = array<i64: 1, 16, 1>}]} {
    %c0_i32 = arith.constant 0 : i32
    %0 = arith.cmpi eq, %arg1, %c0_i32 : i32
    %1 = arith.extui %0 : i1 to i32
    %c0_i32_0 = arith.constant 0 : i32
    %2 = arith.cmpi ne, %1, %c0_i32_0 : i32
    scf.if %2 {
      %cst_19 = arith.constant 0.000000e+00 : f32
      %20 = vector.broadcast %cst_19 : f32 to vector<1x16x1xf32>
      %c0_20 = arith.constant 0 : index
      %c0_21 = arith.constant 0 : index
      %c0_22 = arith.constant 0 : index
      %21 = vector.load %arg4[%c0_20, %c0_21, %c0_22] : memref<1x16x1xf32, #tpu.memory_space<vmem>>, vector<1x16x1xf32>
      tpu.vector_store %arg4[%c0_20, %c0_21, %c0_22], %20 {strides = array<i32>} : memref<1x16x1xf32, #tpu.memory_space<vmem>>, vector<1x16x1xf32>,
      %cst_23 = arith.constant 0.000000e+00 : f32
      %22 = vector.broadcast %cst_23 : f32 to vector<1x16x1xf32>
      %c0_24 = arith.constant 0 : index
      %c0_25 = arith.constant 0 : index
      %c0_26 = arith.constant 0 : index
      %23 = vector.load %arg5[%c0_24, %c0_25, %c0_26] : memref<1x16x1xf32, #tpu.memory_space<vmem>>, vector<1x16x1xf32>
      tpu.vector_store %arg5[%c0_24, %c0_25, %c0_26], %22 {strides = array<i32>} : memref<1x16x1xf32, #tpu.memory_space<vmem>>, vector<1x16x1xf32>,
    } else {
    }
    %c0 = arith.constant 0 : index
    %c0_1 = arith.constant 0 : index
    %3 = vector.load %arg3[%c0, %c0_1] : memref<16x16xbf16, #tpu.memory_space<vmem>>, vector<16x16xbf16>
    %c0_2 = arith.constant 0 : index
    %c0_3 = arith.constant 0 : index
    %c0_4 = arith.constant 0 : index
    %4 = vector.load %arg2[%c0_2, %c0_3, %c0_4] : memref<1x16x128xbf16, #tpu.memory_space<vmem>>, vector<1x16x128xbf16>
    %5 = vector.shape_cast %4 : vector<1x16x128xbf16> to vector<16x128xbf16>
    %cst = arith.constant dense<0.000000e+00> : vector<16x128xf32>
    %6 = tpu.matmul %3, %5, %cst {dimension_numbers = #tpu.dot_dimension_numbers<[1], [0], [0], [1], [0, 0, 1, 1], [], []>} : vector<16x16xbf16>, vector<16x128xbf16>, vector<16x128xf32> -> vector<16x128xf32>
    %c0_5 = arith.constant 0 : index
    %c0_6 = arith.constant 0 : index
    %c0_7 = arith.constant 0 : index
    %7 = vector.load %arg4[%c0_5, %c0_6, %c0_7] : memref<1x16x1xf32, #tpu.memory_space<vmem>>, vector<1x16x1xf32>
    %cst_8 = arith.constant dense<0.000000e+00> : vector<16xf32>
    %8 = vector.multi_reduction <add>, %6, %cst_8 [1] : vector<16x128xf32> to vector<16xf32>
    %9 = vector.shape_cast %8 : vector<16xf32> to vector<16x1xf32>
    %10 = vector.shape_cast %9 : vector<16x1xf32> to vector<1x16x1xf32>
    %11 = arith.addf %7, %10 : vector<1x16x1xf32>
    %c0_9 = arith.constant 0 : index
    %c0_10 = arith.constant 0 : index
    %c0_11 = arith.constant 0 : index
    %12 = vector.load %arg4[%c0_9, %c0_10, %c0_11] : memref<1x16x1xf32, #tpu.memory_space<vmem>>, vector<1x16x1xf32>
    tpu.vector_store %arg4[%c0_9, %c0_10, %c0_11], %11 {strides = array<i32>} : memref<1x16x1xf32, #tpu.memory_space<vmem>>, vector<1x16x1xf32>,
    %c0_12 = arith.constant 0 : index
    %c0_13 = arith.constant 0 : index
    %c0_14 = arith.constant 0 : index
    %13 = vector.load %arg5[%c0_12, %c0_13, %c0_14] : memref<1x16x1xf32, #tpu.memory_space<vmem>>, vector<1x16x1xf32>
    %14 = arith.mulf %6, %6 : vector<16x128xf32>
    %cst_15 = arith.constant dense<0.000000e+00> : vector<16xf32>
    %15 = vector.multi_reduction <add>, %14, %cst_15 [1] : vector<16x128xf32> to vector<16xf32>
    %16 = vector.shape_cast %15 : vector<16xf32> to vector<16x1xf32>
    %17 = vector.shape_cast %16 : vector<16x1xf32> to vector<1x16x1xf32>
    %18 = arith.addf %13, %17 : vector<1x16x1xf32>
    %c0_16 = arith.constant 0 : index
    %c0_17 = arith.constant 0 : index
    %c0_18 = arith.constant 0 : index
    %19 = vector.load %arg5[%c0_16, %c0_17, %c0_18] : memref<1x16x1xf32, #tpu.memory_space<vmem>>, vector<1x16x1xf32>
    tpu.vector_store %arg5[%c0_16, %c0_17, %c0_18], %18 {strides = array<i32>} : memref<1x16x1xf32, #tpu.memory_space<vmem>>, vector<1x16x1xf32>,
    return
  }
  func.func @transform_0(%arg0: i32, %arg1: i32) -> (i32, i32, i32) {
    %c0_i32 = arith.constant 0 : i32
    %c0_i32_0 = arith.constant 0 : i32
    return %arg0, %c0_i32, %arg1 : i32, i32, i32
  }
  func.func @transform_1(%arg0: i32, %arg1: i32) -> (i32, i32) {
    %c0_i32 = arith.constant 0 : i32
    %c0_i32_0 = arith.constant 0 : i32
    %c0_i32_1 = arith.constant 0 : i32
    return %c0_i32, %c0_i32_0 : i32, i32
  }
  func.func @transform_2(%arg0: i32, %arg1: i32) -> (i32, i32, i32) {
    %c0_i32 = arith.constant 0 : i32
    %c0_i32_0 = arith.constant 0 : i32
    %c0_i32_1 = arith.constant 0 : i32
    return %arg0, %c0_i32, %c0_i32_0 : i32, i32, i32
  }
  func.func @transform_3(%arg0: i32, %arg1: i32) -> (i32, i32, i32) {
    %c0_i32 = arith.constant 0 : i32
    %c0_i32_0 = arith.constant 0 : i32
    %c0_i32_1 = arith.constant 0 : i32
    return %arg0, %c0_i32, %c0_i32_0 : i32, i32, i32
  }
}

</mosaic_0001>

<bundles_post_ra>
// kernel: downsample_conv.2
= control target key start
LH: loop header
LB: loop body
LE: loop exit
PB: predicated region body
PF: predicated region fallthrough
CT: control target
= control target key end

     0   :  { %s472_s12 = smov 0   ;;  %s474_s13 = smov 0   ;;  %s519_s0 = inlined_call_operand.vmem [shape: bf16[2,16,128], index: 0, kind: input, shape index: {}]   ;;  %s520_s1 = inlined_call_operand.vmem [shape: bf16[16,16], index: 1, kind: input, shape index: {}]   ;;  %s521_s2 = inlined_call_operand.vmem [shape: f32[2,16,1], index: 2, kind: output, shape index: {0}]   ;;  %s522_s3 = inlined_call_operand.vmem [shape: f32[2,16,1], index: 3, kind: output, shape index: {1}]  }
   0x1   :  { %s476_s14 = smov 0  }
   0x2 LB: > { %s26_s15 = sadd.s32 1, %s445_s13  ;;  %p379_p0 = scmp.ge.s32.totalorder %s449_s14, 1  ;;  %s449_s14 = sphi %s476_s14, %s14_s14   ;;  %s445_s13 = sphi %s474_s13, %s524_s13   ;;  %s441_s12 = sphi %s472_s12, %s523_s12  }
   0x3   : > { %p28_p1 = scmp.ge.s32.totalorder %s26_s15, 2  ;;  %p157_p2 = scmp.lt.s32.totalorder %s449_s14, 3 }
   0x5   : > { %s526_s15 = smov (%p28_p1, %s26_s15), 0  ;;  %p158_p3 = pnand %p379_p0, %p157_p2 }
   0x6   : > { %p189_p4 = scmp.lt.s32.totalorder (!%p158_p3), %s441_s12, 1 }
   0x7   : > { %161 = sbr.rel (%p158_p3) target bundleno = 274 (0x112), region = 28 }
   0xc   : > { %s528_s12 = smov (!%p189_p4, %s441_s12), 1  ;;  %v400_v1 = vld [vmem:[%s520_s1] sm:$0xff]  ;;  %vm232_vm0 = vcmask 130048   ;;  %vm212_vm1 = vcmask 7168   ;;  %v451_v2 = vmov 0.0  }
   0xd   : > { %s397_s16 = sshll.u32 %s528_s12, 3  ;;  %s398_s22 = sshll.u32 %s528_s12, 4 }
   0xe   : > { %s196_s19 = scalar_lea.vmem %s519_s0, %s397_s16  ;;  %s201_s25 = scalar_lea.vmem %s521_s2, %s398_s22 }
   0xf   : > { %v401_v0 = vld [vmem:[%s196_s19] sm:$0xff]  ;;  %s206_s28 = scalar_lea.vmem %s522_s3, %s398_s22  ;;  %213 = vst.msk [vmem:[%s201_s25] sm:$0xff] %vm212_vm1, %v451_v2 }
  0x10   : > { %243 = vmatpush.bf16.msra.mxu0 %v401_v0  ;;  %214 = vst.msk [vmem:[%s201_s25 + $0x8] sm:$0xff] %vm212_vm1, %v451_v2 }
  0x11   : > { %215 = vst.msk [vmem:[%s206_s28] sm:$0xff] %vm212_vm1, %v451_v2 }
  0x12   : > { %216 = vst.msk [vmem:[%s206_s28 + $0x8] sm:$0xff] %vm212_vm1, %v451_v2 }
  0x13   : > { %394 = vmatmul.msk.bf16.vlgmr.msra.gmra.mxu0 %vm232_vm0, %v400_v1 }
  0x16   : > { %v250_v7 = vld [vmem:[%s201_s25] sm:$0xff] }
  0x17   : > { %v251_v13 = vld [vmem:[%s201_s25 + $0x8] sm:$0xff] }
  0x18   : > { %v261_v9 = vld [vmem:[%s206_s28] sm:$0xff] }
  0x19   : > { %v262_v15 = vld [vmem:[%s206_s28 + $0x8] sm:$0xff] }
  0x90   : > { %v245_v3 = vpop.f32.mrf.mxu0 }
  0x91   : > { %252 = vadd.xlane.f32.xlu0 %v245_v3  ;;  %v263_v4 = vmul.f32 %v245_v3, %v245_v3 }
  0x93   : > { %265 = vadd.xlane.f32.xlu1 %v263_v4 }
  0x98   : > { %v247_v5 = vpop.f32.mrf.mxu0 }
  0x99   : > { %v264_v6 = vmul.f32 %v247_v5, %v247_v5  ;;  %254 = vadd.xlane.f32.xlu0 %v247_v5 }
  0x9b   : > { %267 = vadd.xlane.f32.xlu1 %v264_v6 }
 0x104   : > { %v253_v8 = vpop.xlane.xlu0 %252 }
 0x105   : > { %v256_v10 = vadd.f32 %v253_v8, %v250_v7 }
 0x106   : > { %v266_v11 = vpop.xlane.xlu1 %265 }
 0x107   : > { %259 = vst.msk [vmem:[%s201_s25] sm:$0xff] %vm212_vm1, %v256_v10  ;;  %v269_v12 = vadd.f32 %v266_v11, %v261_v9 }
 0x109   : > { %271 = vst.msk [vmem:[%s206_s28] sm:$0xff] %vm212_vm1, %v269_v12 }
 0x10c   : > { %v255_v14 = vpop.xlane.xlu0 %254 }
 0x10d   : > { %v257_v16 = vadd.f32 %v255_v14, %v251_v13 }
 0x10e   : > { %v268_v17 = vpop.xlane.xlu1 %267 }
 0x10f   : > { %260 = vst.msk [vmem:[%s201_s25 + $0x8] sm:$0xff] %vm212_vm1, %v257_v16  ;;  %v270_v18 = vadd.f32 %v268_v17, %v262_v15 }
 0x111   : > { %272 = vst.msk [vmem:[%s206_s28 + $0x8] sm:$0xff] %vm212_vm1, %v270_v18 }
 0x112 PF: > { %s14_s14 = sadd.s32 1, %s449_s14   ;;  %s523_s12 = smov %s445_s13 }
 0x113   : > { %p11_p5 = scmp.ge.s32.totalorder %s14_s14, 4   ;;  %s524_s13 = smov %s526_s15 }
 0x115   :  { %13 = sbr.rel (!%p11_p5) target bundleno = 2 (0x2), region = 74 }

// kernel: downsample_conv.3
= control target key start
LH: loop header
LB: loop body
LE: loop exit
PB: predicated region body
PF: predicated region fallthrough
CT: control target
= control target key end

     0   :  { %s477_s15 = smov 0   ;;  %s479_s16 = smov 0   ;;  %s525_s0 = inlined_call_operand.vmem [shape: bf16[2,16,128], index: 0, kind: input, shape index: {}]   ;;  %s526_s1 = inlined_call_operand.vmem [shape: bf16[16,16], index: 1, kind: input, shape index: {}]   ;;  %s527_s2 = inlined_call_operand.vmem [shape: f32[16,1], index: 2, kind: input, shape index: {}]   ;;  %s528_s3 = inlined_call_operand.vmem [shape: f32[16,1], index: 3, kind: input, shape index: {}]   ;;  %s529_s4 = inlined_call_operand.vmem [shape: f32[2,16,128], index: 4, kind: output, shape index: {}]  }
   0x1   :  { %s481_s17 = smov 0  }
   0x2 LB: > { %s26_s18 = sadd.s32 1, %s445_s16  ;;  %p380_p0 = scmp.ge.s32.totalorder %s449_s17, 1  ;;  %s449_s17 = sphi %s481_s17, %s14_s17   ;;  %s445_s16 = sphi %s479_s16, %s531_s16   ;;  %s441_s15 = sphi %s477_s15, %s530_s15  }
   0x3   : > { %p28_p1 = scmp.ge.s32.totalorder %s26_s18, 2  ;;  %p181_p2 = scmp.lt.s32.totalorder %s449_s17, 3 }
   0x5   : > { %s533_s18 = smov (%p28_p1, %s26_s18), 0  ;;  %p182_p3 = pnand %p380_p0, %p181_p2 }
   0x6   : > { %p213_p4 = scmp.lt.s32.totalorder (!%p182_p3), %s441_s15, 1 }
   0x7   : > { %185 = sbr.rel (%p182_p3) target bundleno = 158 (0x9e), region = 36 }
   0xc   : > { %v263_v0 = vld [vmem:[%s527_s2] sm:$0xff]  ;;  %v451_v2 = vmov 0   ;;  %s535_s15 = smov (!%p213_p4, %s441_s15), 1  ;;  %v264_v5 = vld [vmem:[%s527_s2 + $0x8] sm:$0xff]  ;;  %vm245_vm0 = vcmask 130048  }
   0xd   : > { %v277_v1 = vld [vmem:[%s528_s3] sm:$0xff]  ;;  %425 = vset.pattern.permute.xlu0 %v451_v2  ;;  %426 = vset.pattern.permute.xlu1 %v451_v2  ;;  %s396_s23 = sshll.u32 %s535_s15, 3  ;;  %v278_v6 = vld [vmem:[%s528_s3 + $0x8] sm:$0xff]  ;;  %s397_s7 = sshll.u32 %s535_s15, 4 }
   0xe   : > { %267 = vperm.xlu0 %425, %v263_v0   ;;  %281 = vperm.xlu1 %426, %v277_v1   ;;  %s220_s26 = scalar_lea.vmem %s525_s0, %s396_s23  ;;  %v398_v4 = vld [vmem:[%s526_s1] sm:$0xff]  ;;  %s228_s10 = scalar_lea.vmem %s529_s4, %s397_s7 }
   0xf   : > { %v399_v3 = vld [vmem:[%s220_s26] sm:$0xff] }
  0x10   : > { %256 = vmatpush.bf16.msra.mxu0 %v399_v3 }
  0x13   : > { %393 = vmatmul.msk.bf16.vlgmr.msra.gmra.mxu0 %vm245_vm0, %v398_v4 }
  0x16   : > { %272 = vperm.xlu0 %425, %v264_v5   ;;  %286 = vperm.xlu1 %426, %v278_v6  }
  0x80   : > { %v268_v7 = vpop.permute.xlu0 %267  ;;  %v282_v8 = vpop.permute.xlu1 %281 }
  0x88   : > { %v273_v12 = vpop.permute.xlu0 %272  ;;  %v287_v15 = vpop.permute.xlu1 %286 }
  0x90   : > { %v258_v9 = vpop.f32.mrf.mxu0 }
  0x91   : > { %v275_v10 = vmul.f32 %v268_v7, %v258_v9 }
  0x93   : > { %v289_v11 = vadd.f32 %v282_v8, %v275_v10 }
  0x95   : > { %291 = vst [vmem:[%s228_s10] sm:$0xff] %v289_v11 }
  0x98   : > { %v260_v13 = vpop.f32.mrf.mxu0 }
  0x99   : > { %v276_v14 = vmul.f32 %v273_v12, %v260_v13 }
  0x9b   : > { %v290_v16 = vadd.f32 %v287_v15, %v276_v14 }
  0x9d   : > { %292 = vst [vmem:[%s228_s10 + $0x8] sm:$0xff] %v290_v16 }
  0x9e PF: > { %s14_s17 = sadd.s32 1, %s449_s17   ;;  %s530_s15 = smov %s445_s16 }
  0x9f   : > { %p11_p5 = scmp.ge.s32.totalorder %s14_s17, 4   ;;  %s531_s16 = smov %s533_s18 }
  0xa1   :  { %13 = sbr.rel (!%p11_p5) target bundleno = 2 (0x2), region = 66 }

</bundles_post_ra>
